<compile_context>
chip_gen: v5e
topology: v5e:2x2
jax: 0.10.0
libtpu: 0.0.40
codegen_flags: <defaults>
</compile_context>

<pallas_src>
import functools

import numpy as np
import jax
import jax.numpy as jnp
from jax import lax
from jax.experimental import pallas as pl
from jax.experimental.pallas import tpu as pltpu


def _round_up(x, m):
    return (x + m - 1) // m * m


_VMEM_LIMIT = 32 * 1024 * 1024       # explicit scoped-VMEM limit (safe on v5e/v6e/v7x)
_VMEM_BUDGET = 20 * 1024 * 1024      # target working set, leaves headroom under the limit


# --------------------------------------------------------------------------------------
# Pass 1: input projection.  x @ [W_ih_f | W_ih_b] + bias, split-stored as bf16 per direction.
# --------------------------------------------------------------------------------------
def _input_proj_kernel(x_ref, w_ref, b_ref, gf_ref, gb_ref):
    # x: (tm, D) bf16, w: (D, 8*Hp) bf16, b: (1, 8*Hp) f32 -> gf/gb: (tm, 4*Hp) bf16
    G = gf_ref.shape[1]
    acc = jnp.dot(x_ref[...], w_ref[...], preferred_element_type=jnp.float32) + b_ref[...]
    gf_ref[...] = acc[:, :G].astype(jnp.bfloat16)     # lane-aligned split (G % 128 == 0)
    gb_ref[...] = acc[:, G:].astype(jnp.bfloat16)


def _pick_tm(M, D, Gtot, budget):
    # VMEM estimate: double-buffered x block + 2 bf16 output blocks + (invariant) weight + f32 temp.
    for cand in (1024, 512, 256, 128, 64, 32, 16, 8):
        if M % cand:
            continue
        est = (2 * cand * D * 2) + (2 * cand * Gtot * 2) + (2 * D * Gtot * 2) + cand * Gtot * 4
        if est <= budget:
            return cand
    return 8  # M is always a multiple of 8 (Bp padded to 8)
    # TODO(synk): for very large D*H the weight alone exceeds VMEM; would need an N-tile grid axis.


def input_projection(x_flat, w_cat, b_cat):
    """x_flat: (Tp*Bp, D) bf16, w_cat: (D, 8*Hp) bf16, b_cat: (1, 8*Hp) f32
    -> (gates_fwd, gates_bwd), each (Tp*Bp, 4*Hp) bf16."""
    M, D = x_flat.shape
    Gtot = w_cat.shape[1]
    G = Gtot // 2
    tm = _pick_tm(M, D, Gtot, _VMEM_BUDGET)
    return pl.pallas_call(
        _input_proj_kernel,
        out_shape=(jax.ShapeDtypeStruct((M, G), jnp.bfloat16),
                   jax.ShapeDtypeStruct((M, G), jnp.bfloat16)),
        grid_spec=pltpu.PrefetchScalarGridSpec(
            num_scalar_prefetch=0,
            grid=(M // tm,),
            in_specs=[
                pl.BlockSpec((tm, D), lambda m: (m, 0)),
                pl.BlockSpec((D, Gtot), lambda m: (0, 0)),
                pl.BlockSpec((1, Gtot), lambda m: (0, 0)),
            ],
            out_specs=(pl.BlockSpec((tm, G), lambda m: (m, 0)),
                       pl.BlockSpec((tm, G), lambda m: (m, 0))),
        ),
        compiler_params=pltpu.CompilerParams(
            dimension_semantics=("parallel",),
            vmem_limit_bytes=_VMEM_LIMIT,
        ),
    )(x_flat, w_cat, b_cat)


# --------------------------------------------------------------------------------------
# Pass 2: fused bidirectional recurrence, T-chunked grid, state carried in resident hn/cn blocks.
# --------------------------------------------------------------------------------------
def _bilstm_chunk_kernel(lens_ref, h0_ref, c0_ref, gf_ref, gb_ref, whh_ref,
                         out_f_ref, out_b_ref, hn_ref, cn_ref, *, ntc, Hp):
    tc = pl.program_id(1)            # time-chunk index ("arbitrary" axis)
    TS = gf_ref.shape[0]
    TB = gf_ref.shape[1]
    G = 4 * Hp

    # Initialize the resident carry (hn/cn output blocks double as state) at the first chunk.
    @pl.when(tc == 0)
    def _():
        hn_ref[...] = h0_ref[...]
        cn_ref[...] = c0_ref[...]

    lens = lens_ref[...]                                  # (TB, 1) int32
    t0_f = tc * TS                                        # global start time of fwd chunk
    t0_b = (ntc - 1 - tc) * TS                            # global start time of bwd chunk
    zeros_h = jnp.zeros((TB, Hp), jnp.float32)

    def sigm(x):                                          # one EUP push instead of exp+recip
        return 0.5 * jnp.tanh(0.5 * x) + 0.5

    def body(s, carry):
        h_f, c_f, h_b, c_b = carry
        sb = TS - 1 - s                                   # backward direction's local time

        # One fused block-diagonal hidden matmul per step: (TB, 2Hp) @ (2Hp, 8Hp), K=256.
        h_cat = jnp.concatenate([h_f.astype(jnp.bfloat16), h_b.astype(jnp.bfloat16)], axis=1)
        z = jnp.dot(h_cat, whh_ref[...], preferred_element_type=jnp.float32)   # (TB, 8Hp) f32

        gf = gf_ref[s].astype(jnp.float32) + z[:, :G]     # forward pre-activations (TB, 4Hp)
        gb = gb_ref[sb].astype(jnp.float32) + z[:, G:]    # backward pre-activations

        # forward cell
        i_f = sigm(gf[:, 0:Hp]); f_f = sigm(gf[:, Hp:2 * Hp])
        g_f = jnp.tanh(gf[:, 2 * Hp:3 * Hp]); o_f = sigm(gf[:, 3 * Hp:4 * Hp])
        cf_new = f_f * c_f + i_f * g_f
        hf_new = o_f * jnp.tanh(cf_new)

        # backward cell
        i_b = sigm(gb[:, 0:Hp]); f_b = sigm(gb[:, Hp:2 * Hp])
        g_b = jnp.tanh(gb[:, 2 * Hp:3 * Hp]); o_b = sigm(gb[:, 3 * Hp:4 * Hp])
        cb_new = f_b * c_b + i_b * g_b
        hb_new = o_b * jnp.tanh(cb_new)

        # packed-sequence masks, broadcast once per direction and reused
        vf = jnp.broadcast_to(lens > (t0_f + s), (TB, Hp))
        vb = jnp.broadcast_to(lens > (t0_b + sb), (TB, Hp))

        out_f_ref[s] = jnp.where(vf, hf_new, zeros_h)     # padded outputs = 0
        out_b_ref[sb] = jnp.where(vb, hb_new, zeros_h)

        h_f = jnp.where(vf, hf_new, h_f); c_f = jnp.where(vf, cf_new, c_f)
        h_b = jnp.where(vb, hb_new, h_b); c_b = jnp.where(vb, cb_new, c_b)
        return h_f, c_f, h_b, c_b

    carry0 = (hn_ref[0], cn_ref[0], hn_ref[1], cn_ref[1])
    unroll = 2 if TS >= 2 else 1
    h_f, c_f, h_b, c_b = lax.fori_loop(0, TS, body, carry0, unroll=unroll)

    hn_ref[0] = h_f
    cn_ref[0] = c_f
    hn_ref[1] = h_b
    cn_ref[1] = c_b


def _pick_tb(Bp):
    if Bp <= 64:
        return Bp                           # one slab: fill as many MXU rows as we have
    for cand in (256, 128, 64, 32, 16):     # >=2 slabs (lets megacore shard the batch axis)
        if 2 * cand <= Bp and Bp % cand == 0:
            return cand
    return Bp if Bp <= 512 else 8


def _pick_ts(T, tb, Hp, budget):
    # Fixed VMEM: block-diag weight + h0/c0/hn/cn blocks (all double-buffered).
    fixed = 2 * (2 * Hp) * (8 * Hp) * 2 + 8 * (2 * tb * Hp * 4)
    per_t = tb * Hp * (32 + 16)             # bf16 gates (2 dirs, x2 buf) + f32 outs (2 dirs, x2 buf)
    best_ts, best_cost = 1, None
    for c in (128, 64, 32, 16, 8, 4, 2, 1):
        if fixed + c * per_t > budget:
            continue
        ntc = -(-T // c)
        cost = ntc * c + 2 * ntc            # padded recurrence steps + per-chunk overhead (~2 steps)
        if best_cost is None or cost < best_cost:
            best_ts, best_cost = c, cost
    return best_ts


def run_bilstm(gates_f, gates_b, lens_p, h0_p, c0_p, whh_bd, tb, ts):
    """gates_*: (Tp, Bp, 4*Hp) bf16; lens_p: (Bp,1) i32; h0/c0: (2, Bp, Hp) f32;
    whh_bd: (2*Hp, 8*Hp) bf16 block-diagonal.  Returns out_f, out_b, hn, cn."""
    Tp, Bp, G = gates_f.shape
    Hp = h0_p.shape[2]
    ntc = Tp // ts
    nb = Bp // tb
    kernel = functools.partial(_bilstm_chunk_kernel, ntc=ntc, Hp=Hp)
    out_shapes = (
        jax.ShapeDtypeStruct((Tp, Bp, Hp), jnp.float32),   # forward outputs
        jax.ShapeDtypeStruct((Tp, Bp, Hp), jnp.float32),   # backward outputs
        jax.ShapeDtypeStruct((2, Bp, Hp), jnp.float32),    # hn
        jax.ShapeDtypeStruct((2, Bp, Hp), jnp.float32),    # cn
    )
    return pl.pallas_call(
        kernel,
        out_shape=out_shapes,
        grid_spec=pltpu.PrefetchScalarGridSpec(
            num_scalar_prefetch=0,
            grid=(nb, ntc),
            in_specs=[
                pl.BlockSpec((tb, 1), lambda b, t: (b, 0)),                    # lens
                pl.BlockSpec((2, tb, Hp), lambda b, t: (0, b, 0)),             # h0
                pl.BlockSpec((2, tb, Hp), lambda b, t: (0, b, 0)),             # c0
                pl.BlockSpec((ts, tb, G), lambda b, t: (t, b, 0)),             # fwd gates chunk
                pl.BlockSpec((ts, tb, G), lambda b, t: (ntc - 1 - t, b, 0)),   # bwd gates (reversed)
                pl.BlockSpec((2 * Hp, 8 * Hp), lambda b, t: (0, 0)),           # block-diag W_hh
            ],
            out_specs=(
                pl.BlockSpec((ts, tb, Hp), lambda b, t: (t, b, 0)),            # out_f chunk
                pl.BlockSpec((ts, tb, Hp), lambda b, t: (ntc - 1 - t, b, 0)),  # out_b chunk
                pl.BlockSpec((2, tb, Hp), lambda b, t: (0, b, 0)),             # hn (resident carry)
                pl.BlockSpec((2, tb, Hp), lambda b, t: (0, b, 0)),             # cn (resident carry)
            ),
        ),
        compiler_params=pltpu.CompilerParams(
            dimension_semantics=("parallel", "arbitrary"),
            vmem_limit_bytes=_VMEM_LIMIT,
        ),
    )(lens_p, h0_p, c0_p, gates_f, gates_b, whh_bd)


# --------------------------------------------------------------------------------------
# Parameters (PyTorch layout) + one-time preparation into padded / bf16 kernel layout.
# --------------------------------------------------------------------------------------
def init_params(key, nwords, input_size, hidden_size):
    D, H = input_size, hidden_size
    ks = jax.random.split(key, 9)
    bound = 1.0 / np.sqrt(H)
    u = lambda k, shape: jax.random.uniform(k, shape, jnp.float32, -bound, bound)
    return {
        "embedding": jax.random.normal(ks[0], (nwords, D), jnp.float32),
        "wih_f": u(ks[1], (4 * H, D)),   # PyTorch weight_ih_l0        (4H, D)
        "whh_f": u(ks[2], (4 * H, H)),   # PyTorch weight_hh_l0        (4H, H)
        "bih_f": u(ks[3], (4 * H,)),
        "bhh_f": u(ks[4], (4 * H,)),
        "wih_b": u(ks[5], (4 * H, D)),   # *_reverse
        "whh_b": u(ks[6], (4 * H, H)),
        "bih_b": u(ks[7], (4 * H,)),
        "bhh_b": u(ks[8], (4 * H,)),
    }


def prepare_kernel_params(params, hidden_size):
    H = hidden_size
    Hp = _round_up(H, 128)               # each gate block padded to a full 128-lane tile

    def pad_gate_cols(wT):               # (rows, 4H) -> (rows, 4Hp); gate g at [g*Hp : g*Hp+H]
        rows = wT.shape[0]
        out = jnp.zeros((rows, 4 * Hp), jnp.float32)
        for g in range(4):
            out = out.at[:, g * Hp:g * Hp + H].set(wT[:, g * H:(g + 1) * H])
        return out

    def pad_whh(whh):                    # (4H, H) -> (Hp, 4Hp); padded rows are zero
        wT = pad_gate_cols(whh.T)        # (H, 4Hp)
        return jnp.zeros((Hp, 4 * Hp), jnp.float32).at[:H, :].set(wT)

    wih_f = pad_gate_cols(params["wih_f"].T)                                    # (D, 4Hp)
    wih_b = pad_gate_cols(params["wih_b"].T)
    b_f = pad_gate_cols((params["bih_f"] + params["bhh_f"]).reshape(1, 4 * H))  # (1, 4Hp)
    b_b = pad_gate_cols((params["bih_b"] + params["bhh_b"]).reshape(1, 4 * H))

    # Block-diagonal hidden weight: [h_f | h_b] (.,2Hp) @ (2Hp, 8Hp) -> [fwd gates | bwd gates].
    whh_bd = jnp.zeros((2 * Hp, 8 * Hp), jnp.float32)
    whh_bd = whh_bd.at[:Hp, :4 * Hp].set(pad_whh(params["whh_f"]))
    whh_bd = whh_bd.at[Hp:, 4 * Hp:].set(pad_whh(params["whh_b"]))

    return {
        "Hp": Hp,
        "w_ih_cat": jnp.concatenate([wih_f, wih_b], axis=1).astype(jnp.bfloat16),  # (D, 8Hp)
        "b_cat": jnp.concatenate([b_f, b_b], axis=1),                              # (1, 8Hp) f32
        "whh_bd": whh_bd.astype(jnp.bfloat16),                                     # (2Hp, 8Hp)
    }


# --------------------------------------------------------------------------------------
# Forward pass mirroring TextEncoder.forward (eval mode).
# --------------------------------------------------------------------------------------
def text_encoder_forward(params, kparams, captions, caplen, initial_hidden, hidden_size):
    """captions: (B, T) int32; caplen: host lengths (numpy, descending); h0/c0: (2, B, H).
    Returns (sent_emb (B, 2H), word_emb (B, 2H, max_len))."""
    B, _ = captions.shape
    H = hidden_size
    Hp = kparams["Hp"]
    D = params["embedding"].shape[1]
    h0, c0 = initial_hidden

    caplen_np = np.asarray(caplen)
    max_len = int(caplen_np.max())       # host value -> static trim of the time axis
    captions = captions[:, :max_len]
    T = max_len
    Bp = _round_up(max(B, 1), 8)         # pad batch to the f32 sublane multiple

    # Tiling decisions (VMEM-aware): batch slab, time-chunk, padded time extent.
    tb = _pick_tb(Bp)
    ts = _pick_ts(T, tb, Hp, _VMEM_BUDGET)
    Tp = _round_up(T, ts)

    # Embedding gather directly in time-major layout (no activation transpose).
    x = jnp.take(params["embedding"], captions.T.astype(jnp.int32), axis=0)   # (T, B, D)
    # Dropout(0.1): identity in eval mode.
    # TODO(synk): training-mode dropout (Bernoulli mask via pltpu.prng_*) not implemented.

    # Pad time & batch; padded rows/steps are masked out via lens.
    x_p = jnp.pad(x, ((0, Tp - T), (0, Bp - B), (0, 0))).astype(jnp.bfloat16)
    lens = jnp.zeros((Bp, 1), jnp.int32).at[:B, 0].set(jnp.asarray(caplen_np, jnp.int32))
    h0_p = jnp.zeros((2, Bp, Hp), jnp.float32).at[:, :B, :H].set(h0.astype(jnp.float32))
    c0_p = jnp.zeros((2, Bp, Hp), jnp.float32).at[:, :B, :H].set(c0.astype(jnp.float32))

    # Pass 1: all input projections (both directions, all timesteps) as one MXU matmul, bf16 out.
    gf_flat, gb_flat = input_projection(x_p.reshape(Tp * Bp, D),
                                        kparams["w_ih_cat"], kparams["b_cat"])
    gates_f = gf_flat.reshape(Tp, Bp, 4 * Hp)
    gates_b = gb_flat.reshape(Tp, Bp, 4 * Hp)

    # Pass 2: fused forward+backward recurrence, T-chunked, batch-parallel grid.
    out_f, out_b, hn, cn = run_bilstm(gates_f, gates_b, lens, h0_p, c0_p,
                                      kparams["whh_bd"], tb, ts)

    # sent_emb = hn.transpose(0,1).reshape(B, 2H)
    sent_emb = jnp.transpose(hn[:, :B, :H], (1, 0, 2)).reshape(B, 2 * H)

    # word_emb = pad_packed_sequence(...).transpose(1,2) -> (B, 2H, max_len)
    wf = jnp.transpose(out_f[:T, :B, :H], (1, 2, 0))   # (B, H, T)
    wb = jnp.transpose(out_b[:T, :B, :H], (1, 2, 0))
    word_emb = jnp.concatenate([wf, wb], axis=1)
    return sent_emb, word_emb


if __name__ == "__main__":
    nwords, input_size, hidden_size = 50, 32, 32
    B, T = 2, 8

    key = jax.random.PRNGKey(0)
    kp, kc, kh, kcc = jax.random.split(key, 4)

    params = init_params(kp, nwords, input_size, hidden_size)
    kparams = prepare_kernel_params(params, hidden_size)

    captions = jax.random.randint(kc, (B, T), 0, nwords, dtype=jnp.int32)
    caplen = np.array([8, 5], dtype=np.int32)          # sorted descending (enforce_sorted)
    h0 = jax.random.normal(kh, (2, B, hidden_size), jnp.float32)
    c0 = jax.random.normal(kcc, (2, B, hidden_size), jnp.float32)

    sent_emb, word_emb = text_encoder_forward(
        params, kparams, captions, caplen, (h0, c0), hidden_size)
    jax.block_until_ready((sent_emb, word_emb))

    assert sent_emb.shape == (B, 2 * hidden_size)
    assert word_emb.shape == (B, 2 * hidden_size, int(caplen.max()))
    assert bool(jnp.all(jnp.isfinite(sent_emb))) and bool(jnp.all(jnp.isfinite(word_emb)))
    print("KERNEL_OK")
</pallas_src>

<mosaic_0001>
module attributes {stable_mosaic.version = 11 : i64} {
  func.func @_input_proj_kernel(%arg0: i32, %arg1: memref<64x32xbf16, #tpu.memory_space<vmem>>, %arg2: memref<32x1024xbf16, #tpu.memory_space<vmem>>, %arg3: memref<1x1024xf32, #tpu.memory_space<vmem>>, %arg4: memref<64x512xbf16, #tpu.memory_space<vmem>>, %arg5: memref<64x512xbf16, #tpu.memory_space<vmem>>) attributes {dimension_semantics = [#tpu.dimension_semantics<parallel>], iteration_bounds = array<i64: 1>, scalar_prefetch = 0 : i64, scratch_operands = 0 : i64, tpu.core_type = #tpu.core_type<tc>, window_params = [{transform_indices = @transform_0, window_bounds = array<i64: 64, 32>}, {pipeline_mode = #tpu.pipeline_mode<synchronous>, transform_indices = @transform_1, window_bounds = array<i64: 32, 1024>}, {pipeline_mode = #tpu.pipeline_mode<synchronous>, transform_indices = @transform_2, window_bounds = array<i64: 1, 1024>}, {transform_indices = @transform_3, window_bounds = array<i64: 64, 512>}, {transform_indices = @transform_4, window_bounds = array<i64: 64, 512>}]} {
    %c0 = arith.constant 0 : index
    %c0_0 = arith.constant 0 : index
    %0 = vector.load %arg1[%c0, %c0_0] : memref<64x32xbf16, #tpu.memory_space<vmem>>, vector<64x32xbf16>
    %c0_1 = arith.constant 0 : index
    %c0_2 = arith.constant 0 : index
    %1 = vector.load %arg2[%c0_1, %c0_2] : memref<32x1024xbf16, #tpu.memory_space<vmem>>, vector<32x1024xbf16>
    %cst = arith.constant dense<0.000000e+00> : vector<64x1024xf32>
    %2 = tpu.matmul %0, %1, %cst {dimension_numbers = #tpu.dot_dimension_numbers<[1], [0], [0], [1], [0, 0, 1, 1], [], []>} : vector<64x32xbf16>, vector<32x1024xbf16>, vector<64x1024xf32> -> vector<64x1024xf32>
    %c0_3 = arith.constant 0 : index
    %c0_4 = arith.constant 0 : index
    %3 = vector.load %arg3[%c0_3, %c0_4] : memref<1x1024xf32, #tpu.memory_space<vmem>>, vector<1x1024xf32>
    %4 = vector.broadcast %3 : vector<1x1024xf32> to vector<64x1024xf32>
    %5 = arith.addf %2, %4 : vector<64x1024xf32>
    %6 = vector.extract_strided_slice %5 {offsets = [0, 0], sizes = [64, 512], strides = [1, 1]} : vector<64x1024xf32> to vector<64x512xf32>
    %7 = arith.truncf %6 : vector<64x512xf32> to vector<64x512xbf16>
    %c0_5 = arith.constant 0 : index
    %c0_6 = arith.constant 0 : index
    %8 = vector.load %arg4[%c0_5, %c0_6] : memref<64x512xbf16, #tpu.memory_space<vmem>>, vector<64x512xbf16>
    tpu.vector_store %arg4[%c0_5, %c0_6], %7 {strides = array<i32>} : memref<64x512xbf16, #tpu.memory_space<vmem>>, vector<64x512xbf16>,
    %9 = vector.extract_strided_slice %5 {offsets = [0, 512], sizes = [64, 512], strides = [1, 1]} : vector<64x1024xf32> to vector<64x512xf32>
    %10 = arith.truncf %9 : vector<64x512xf32> to vector<64x512xbf16>
    %c0_7 = arith.constant 0 : index
    %c0_8 = arith.constant 0 : index
    %11 = vector.load %arg5[%c0_7, %c0_8] : memref<64x512xbf16, #tpu.memory_space<vmem>>, vector<64x512xbf16>
    tpu.vector_store %arg5[%c0_7, %c0_8], %10 {strides = array<i32>} : memref<64x512xbf16, #tpu.memory_space<vmem>>, vector<64x512xbf16>,
    return
  }
  func.func @transform_0(%arg0: i32) -> (i32, i32) {
    %c0_i32 = arith.constant 0 : i32
    %c0_i32_0 = arith.constant 0 : i32
    return %arg0, %c0_i32 : i32, i32
  }
  func.func @transform_1(%arg0: i32) -> (i32, i32) {
    %c0_i32 = arith.constant 0 : i32
    %c0_i32_0 = arith.constant 0 : i32
    %c0_i32_1 = arith.constant 0 : i32
    return %c0_i32, %c0_i32_0 : i32, i32
  }
  func.func @transform_2(%arg0: i32) -> (i32, i32) {
    %c0_i32 = arith.constant 0 : i32
    %c0_i32_0 = arith.constant 0 : i32
    %c0_i32_1 = arith.constant 0 : i32
    return %c0_i32, %c0_i32_0 : i32, i32
  }
  func.func @transform_3(%arg0: i32) -> (i32, i32) {
    %c0_i32 = arith.constant 0 : i32
    %c0_i32_0 = arith.constant 0 : i32
    return %arg0, %c0_i32 : i32, i32
  }
  func.func @transform_4(%arg0: i32) -> (i32, i32) {
    %c0_i32 = arith.constant 0 : i32
    %c0_i32_0 = arith.constant 0 : i32
    return %arg0, %c0_i32 : i32, i32
  }
}

</mosaic_0001>

<bundles_post_ra>
// kernel: tpu_custom_call.1
= control target key start
LH: loop header
LB: loop body
LE: loop exit
PB: predicated region body
PF: predicated region fallthrough
CT: control target
= control target key end

     0   :  { %10 = vsyncpa [#allocation3], 0  ;;  %s924_s0 = inlined_call_operand.vmem [shape: bf16[64,32], index: 0, kind: input, shape index: {}]   ;;  %s925_s1 = inlined_call_operand.hbm [shape: bf16[32,1024], index: 1, kind: input, shape index: {}]   ;;  %s926_s2 = inlined_call_operand.vmem [shape: f32[1,1024], index: 2, kind: input, shape index: {}]   ;;  %s927_s3 = inlined_call_operand.hbm [shape: bf16[64,512], index: 3, kind: output, shape index: {0}]   ;;  %s928_s4 = inlined_call_operand.hbm [shape: bf16[64,512], index: 4, kind: output, shape index: {1}]  }
   0x1   :  { %11 = vsyncpa [#allocation4], 0 }
   0x2   :  { %12 = vsyncpa [#allocation7], 0  ;;  %s19_s17 = sshll.u32 %s925_s1, 4  ;;  %s740_s18 = smov [#allocation2]   ;;  %s20_s17 = int_to_ptr.hbm [resolvable:$true] %s19_s17 }
   0x3   :  { %s21_s19 = sshll.u32 %s740_s18, 4  ;;  %s741_s20 = smov 512   ;;  %s22_s19 = int_to_ptr.vmem [resolvable:$true] %s21_s19 }
   0x4   :  { %s742_s21 = smov 32  }
   0x5   :  { %27 = dma.hbm_to_vmem [thread:$0]  %s20_s17, 2048, %s22_s19, [#allocation3], %s741_s20, %s741_s20, %s742_s21  }
   0x6   :  { %734 = dma.done.wait [#allocation3], 2048  }
   0x7   :  { %735 = vsyncadd [#allocation3], 4294965248  ;;  %v573_v0 = vld [vmem:[#allocation2 + $0x40] sm:$0xf]  ;;  %v647_v2 = vld [vmem:[#allocation2 + $0x44] sm:$0xf] }
   0x8   :  { %v651_v1 = vld [vmem:[#allocation2 + $0x5c] sm:$0xf0]  ;;  %v575_v4 = vld [vmem:[#allocation2 + $0x60] sm:$0xf0]  ;;  %v581_v5 = vld [vmem:[#allocation2 + $0x48] sm:$0xf] }
   0x9   :  { %v574_v3 = vor.u32 %v651_v1, %v573_v0  ;;  %v652_v6 = vld [vmem:[#allocation2 + $0x64] sm:$0xf0]  ;;  %v578_v7 = vor.u32 %v647_v2, %v575_v4  ;;  %v648_v9 = vld [vmem:[#allocation2 + $0x4c] sm:$0xf]  ;;  %v541_v11 = vld [vmem:[#allocation2] sm:$0xf] }
   0xa   :  { %v582_v8 = vor.u32 %v652_v6, %v581_v5  ;;  %v583_v10 = vld [vmem:[#allocation2 + $0x68] sm:$0xf0]  ;;  %v643_v13 = vld [vmem:[#allocation2 + $0x1c] sm:$0xf0]  ;;  %v639_v14 = vld [vmem:[#allocation2 + $0x4] sm:$0xf] }
   0xb   :  { %196 = vmatpush.bf16.msra.mxu0 %v574_v3  ;;  %v586_v12 = vor.u32 %v648_v9, %v583_v10  ;;  %v543_v15 = vld [vmem:[#allocation2 + $0x20] sm:$0xf0]  ;;  %225 = vmatpush.bf16.msra.mxu1 %v578_v7  ;;  %v542_v16 = vor.u32 %v643_v13, %v541_v11  ;;  %v549_v18 = vld [vmem:[#allocation2 + $0x8] sm:$0xf]  ;;  %v640_v20 = vld [vmem:[#allocation2 + $0xc] sm:$0xf] }
   0xc   :  { %254 = vmatpush.bf16.msra.mxu2 %v582_v8  ;;  %v546_v17 = vor.u32 %v639_v14, %v543_v15  ;;  %v644_v19 = vld [vmem:[#allocation2 + $0x24] sm:$0xf0]  ;;  %v551_v22 = vld [vmem:[#allocation2 + $0x28] sm:$0xf0]  ;;  %v635_v23 = vld [vmem:[%s924_s0] sm:$0xff]  ;;  %vm177_vm0 = vcmask 261120  }
   0xd   :  { %283 = vmatpush.bf16.msra.mxu3 %v586_v12  ;;  %v550_v21 = vor.u32 %v644_v19, %v549_v18  ;;  %v597_v24 = vld [vmem:[#allocation2 + $0x58] sm:$0xf]  ;;  %v554_v25 = vor.u32 %v640_v20, %v551_v22  ;;  %v650_v27 = vld [vmem:[#allocation2 + $0x5c] sm:$0xf]  ;;  %v589_v31 = vld [vmem:[#allocation2 + $0x50] sm:$0xf] }
   0xe   :  { %v654_v26 = vld [vmem:[#allocation2 + $0x74] sm:$0xf0]  ;;  %v599_v28 = vld [vmem:[#allocation2 + $0x78] sm:$0xf0]  ;;  %v653_v32 = vld [vmem:[#allocation2 + $0x6c] sm:$0xf0] }
   0xf   :  { %197 = vmatpush.bf16.msra.mxu0 %v542_v16  ;;  %v598_v29 = vor.u32 %v654_v26, %v597_v24  ;;  %v602_v30 = vor.u32 %v650_v27, %v599_v28  ;;  %v649_v33 = vld [vmem:[#allocation2 + $0x54] sm:$0xf]  ;;  %226 = vmatpush.bf16.msra.mxu1 %v546_v17  ;;  %v590_v34 = vor.u32 %v653_v32, %v589_v31  ;;  %v565_v37 = vld [vmem:[#allocation2 + $0x18] sm:$0xf]  ;;  %v642_v39 = vld [vmem:[#allocation2 + $0x1c] sm:$0xf] }
  0x10   :  { %255 = vmatpush.bf16.msra.mxu2 %v550_v21  ;;  %v591_v35 = vld [vmem:[#allocation2 + $0x70] sm:$0xf0]  ;;  %v646_v38 = vld [vmem:[#allocation2 + $0x34] sm:$0xf0]  ;;  %v567_v41 = vld [vmem:[#allocation2 + $0x38] sm:$0xf0] }
  0x11   :  { %284 = vmatpush.bf16.msra.mxu3 %v554_v25  ;;  %v594_v36 = vor.u32 %v649_v33, %v591_v35  ;;  %v566_v40 = vor.u32 %v646_v38, %v565_v37  ;;  %v557_v42 = vld [vmem:[#allocation2 + $0x10] sm:$0xf]  ;;  %v570_v44 = vor.u32 %v642_v39, %v567_v41  ;;  %v641_v46 = vld [vmem:[#allocation2 + $0x14] sm:$0xf]  ;;  %v636_v49 = vld [vmem:[%s924_s0 + $0x8] sm:$0xff]  ;;  %s492_s7 = sshll.u32 %s927_s3, 4  ;;  %s493_s7 = int_to_ptr.hbm [resolvable:$true] %s492_s7 }
  0x12   :  { %603 = vmatmul.msk.bf16.vlgmr.msra.gmra.mxu0 %vm177_vm0, %v635_v23  ;;  %607 = vmatmul.msk.bf16.vlgmr.msra.gmra.mxu1 %vm177_vm0, %v635_v23  ;;  %v645_v43 = vld [vmem:[#allocation2 + $0x2c] sm:$0xf0]  ;;  %v559_v47 = vld [vmem:[#allocation2 + $0x30] sm:$0xf0]  ;;  %v638_v51 = vld [vmem:[%s924_s0 + $0x18] sm:$0xff]  ;;  %s744_s3 = smov 256  }
  0x13   :  { %611 = vmatmul.msk.bf16.vlgmr.msra.gmra.mxu2 %vm177_vm0, %v635_v23  ;;  %312 = vmatpush.bf16.msrb.mxu0 %v590_v34  ;;  %v558_v45 = vor.u32 %v645_v43, %v557_v42  ;;  %v562_v48 = vor.u32 %v641_v46, %v559_v47  ;;  %v637_v50 = vld [vmem:[%s924_s0 + $0x10] sm:$0xff]  ;;  %v822_v52 = vld [vmem:[%s926_s2] sm:$0xff]  ;;  %s743_s2 = smov [#allocation5]   ;;  %s745_s8 = smov 16  }
  0x14   :  { %370 = vmatpush.bf16.msrb.mxu2 %v598_v29  ;;  %615 = vmatmul.msk.bf16.vlgmr.msra.gmra.mxu3 %vm177_vm0, %v635_v23  ;;  %v825_v53 = vperm.slane %v822_v52, 0  ;;  %v828_v54 = vperm.slane %v822_v52, 1  ;;  %v833_v60 = vperm.slane %v822_v52, 2  ;;  %v836_v61 = vperm.slane %v822_v52, 3  ;;  %s490_s30 = sshll.u32 %s743_s2, 4  ;;  %s746_s9 = smov [#allocation6]   ;;  %s491_s30 = int_to_ptr.vmem [resolvable:$true] %s490_s30 }
  0x15   :  { %399 = vmatpush.bf16.msrb.mxu3 %v602_v30  ;;  %341 = vmatpush.bf16.msrb.mxu1 %v594_v36  ;;  %s503_s10 = sshll.u32 %s746_s9, 4  ;;  %s505_s13 = sshll.u32 %s928_s4, 4  ;;  %s504_s10 = int_to_ptr.vmem [resolvable:$true] %s503_s10  ;;  %s506_s13 = int_to_ptr.hbm [resolvable:$true] %s505_s13 }
  0x17   :  { %313 = vmatpush.bf16.msrb.mxu0 %v558_v45 }
  0x18   :  { %371 = vmatpush.bf16.msrb.mxu2 %v566_v40 }
  0x19   :  { %400 = vmatpush.bf16.msrb.mxu3 %v570_v44  ;;  %342 = vmatpush.bf16.msrb.mxu1 %v562_v48 }
  0x22   :  { %604 = vmatmul.msk.bf16.gmra.mxu0 %vm177_vm0, %v636_v49  ;;  %608 = vmatmul.msk.bf16.gmra.mxu1 %vm177_vm0, %v636_v49 }
  0x23   :  { %612 = vmatmul.msk.bf16.gmra.mxu2 %vm177_vm0, %v636_v49 }
  0x24   :  { %616 = vmatmul.msk.bf16.gmra.mxu3 %vm177_vm0, %v636_v49 }
  0x32   :  { %605 = vmatmul.msk.bf16.gmra.mxu0 %vm177_vm0, %v637_v50  ;;  %609 = vmatmul.msk.bf16.gmra.mxu1 %vm177_vm0, %v637_v50 }
  0x33   :  { %613 = vmatmul.msk.bf16.gmra.mxu2 %vm177_vm0, %v637_v50 }
  0x34   :  { %617 = vmatmul.msk.bf16.gmra.mxu3 %vm177_vm0, %v637_v50 }
  0x42   :  { %606 = vmatmul.msk.bf16.gmra.mxu0 %vm177_vm0, %v638_v51  ;;  %610 = vmatmul.msk.bf16.gmra.mxu1 %vm177_vm0, %v638_v51 }
  0x43   :  { %614 = vmatmul.msk.bf16.gmra.mxu2 %vm177_vm0, %v638_v51 }
  0x44   :  { %618 = vmatmul.msk.bf16.gmra.mxu3 %vm177_vm0, %v638_v51 }
  0x52   :  { %619 = vmatmul.msk.bf16.vlgmr.msrb.gmra.mxu0 %vm177_vm0, %v635_v23  ;;  %623 = vmatmul.msk.bf16.vlgmr.msrb.gmra.mxu1 %vm177_vm0, %v635_v23 }
  0x53   :  { %627 = vmatmul.msk.bf16.vlgmr.msrb.gmra.mxu2 %vm177_vm0, %v635_v23 }
  0x54   :  { %631 = vmatmul.msk.bf16.vlgmr.msrb.gmra.mxu3 %vm177_vm0, %v635_v23 }
  0x62   :  { %620 = vmatmul.msk.bf16.gmra.mxu0 %vm177_vm0, %v636_v49  ;;  %624 = vmatmul.msk.bf16.gmra.mxu1 %vm177_vm0, %v636_v49 }
  0x63   :  { %628 = vmatmul.msk.bf16.gmra.mxu2 %vm177_vm0, %v636_v49 }
  0x64   :  { %632 = vmatmul.msk.bf16.gmra.mxu3 %vm177_vm0, %v636_v49 }
  0x72   :  { %621 = vmatmul.msk.bf16.gmra.mxu0 %vm177_vm0, %v637_v50  ;;  %625 = vmatmul.msk.bf16.gmra.mxu1 %vm177_vm0, %v637_v50 }
  0x73   :  { %629 = vmatmul.msk.bf16.gmra.mxu2 %vm177_vm0, %v637_v50 }
  0x74   :  { %633 = vmatmul.msk.bf16.gmra.mxu3 %vm177_vm0, %v637_v50 }
  0x82   :  { %622 = vmatmul.msk.bf16.gmra.mxu0 %vm177_vm0, %v638_v51  ;;  %626 = vmatmul.msk.bf16.gmra.mxu1 %vm177_vm0, %v638_v51 }
  0x83   :  { %630 = vmatmul.msk.bf16.gmra.mxu2 %vm177_vm0, %v638_v51 }
  0x84   :  { %634 = vmatmul.msk.bf16.gmra.mxu3 %vm177_vm0, %v638_v51 }
  0x8f   :  { %v199_v55 = vpop.f32.mrf.mxu0  ;;  %v228_v57 = vpop.f32.mrf.mxu1 }
  0x90   :  { %v200_v56 = vadd.f32 %v199_v55, %v825_v53  ;;  %v229_v58 = vadd.f32 %v228_v57, %v828_v54 }
  0x92   :  { %v422_v59 = vpack.c.bf16 %v229_v58, %v200_v56 }
  0x94   :  { %438 = vst [vmem:[#allocation5] sm:$0xff] %v422_v59 }
  0x96   :  { %v257_v62 = vpop.f32.mrf.mxu2 }
  0x97   :  { %v258_v63 = vadd.f32 %v257_v62, %v833_v60  ;;  %v286_v0 = vpop.f32.mrf.mxu3  ;;  %v201_v1 = vpop.f32.mrf.mxu0 }
  0x98   :  { %v287_v2 = vadd.f32 %v286_v0, %v836_v61  ;;  %v202_v3 = vadd.f32 %v201_v1, %v825_v53  ;;  %v230_v4 = vpop.f32.mrf.mxu1 }
  0x99   :  { %v231_v5 = vadd.f32 %v230_v4, %v828_v54 }
  0x9a   :  { %v423_v6 = vpack.c.bf16 %v287_v2, %v258_v63 }
  0x9b   :  { %v424_v7 = vpack.c.bf16 %v231_v5, %v202_v3 }
  0x9c   :  { %439 = vst [vmem:[#allocation5 + $0x8] sm:$0xff] %v423_v6 }
  0x9d   :  { %440 = vst [vmem:[#allocation5 + $0x10] sm:$0xff] %v424_v7 }
  0x9e   :  { %v259_v8 = vpop.f32.mrf.mxu2 }
  0x9f   :  { %v260_v9 = vadd.f32 %v259_v8, %v833_v60  ;;  %v288_v10 = vpop.f32.mrf.mxu3  ;;  %v204_v11 = vpop.f32.mrf.mxu0 }
  0xa0   :  { %v289_v12 = vadd.f32 %v288_v10, %v836_v61  ;;  %v205_v13 = vadd.f32 %v204_v11, %v825_v53  ;;  %v233_v14 = vpop.f32.mrf.mxu1  ;;  %v870_v10 = vperm.slane %v822_v52, 5 }
  0xa1   :  { %v234_v15 = vadd.f32 %v233_v14, %v828_v54 }
  0xa2   :  { %v425_v16 = vpack.c.bf16 %v289_v12, %v260_v9  ;;  %v867_v9 = vperm.slane %v822_v52, 4 }
  0xa3   :  { %v426_v17 = vpack.c.bf16 %v234_v15, %v205_v13 }
  0xa4   :  { %441 = vst [vmem:[#allocation5 + $0x18] sm:$0xff] %v425_v16 }
  0xa5   :  { %442 = vst [vmem:[#allocation5 + $0x20] sm:$0xff] %v426_v17 }
  0xa6   :  { %v262_v18 = vpop.f32.mrf.mxu2 }
  0xa7   :  { %v263_v19 = vadd.f32 %v262_v18, %v833_v60  ;;  %v291_v20 = vpop.f32.mrf.mxu3  ;;  %v206_v21 = vpop.f32.mrf.mxu0 }
  0xa8   :  { %v292_v22 = vadd.f32 %v291_v20, %v836_v61  ;;  %v207_v23 = vadd.f32 %v206_v21, %v825_v53  ;;  %v235_v24 = vpop.f32.mrf.mxu1  ;;  %v883_v20 = vperm.slane %v822_v52, 7 }
  0xa9   :  { %v236_v25 = vadd.f32 %v235_v24, %v828_v54 }
  0xaa   :  { %v427_v26 = vpack.c.bf16 %v292_v22, %v263_v19  ;;  %v880_v19 = vperm.slane %v822_v52, 6 }
  0xab   :  { %v428_v27 = vpack.c.bf16 %v236_v25, %v207_v23 }
  0xac   :  { %443 = vst [vmem:[#allocation5 + $0x28] sm:$0xff] %v427_v26 }
  0xad   :  { %444 = vst [vmem:[#allocation5 + $0x30] sm:$0xff] %v428_v27 }
  0xae   :  { %v264_v28 = vpop.f32.mrf.mxu2 }
  0xaf   :  { %v265_v29 = vadd.f32 %v264_v28, %v833_v60  ;;  %v293_v30 = vpop.f32.mrf.mxu3  ;;  %v209_v31 = vpop.f32.mrf.mxu0 }
  0xb0   :  { %v294_v32 = vadd.f32 %v293_v30, %v836_v61  ;;  %v210_v33 = vadd.f32 %v209_v31, %v825_v53  ;;  %v238_v34 = vpop.f32.mrf.mxu1 }
  0xb1   :  { %v239_v35 = vadd.f32 %v238_v34, %v828_v54 }
  0xb2   :  { %v429_v36 = vpack.c.bf16 %v294_v32, %v265_v29 }
  0xb3   :  { %v430_v37 = vpack.c.bf16 %v239_v35, %v210_v33 }
  0xb4   :  { %445 = vst [vmem:[#allocation5 + $0x38] sm:$0xff] %v429_v36 }
  0xb5   :  { %446 = vst [vmem:[#allocation5 + $0x40] sm:$0xff] %v430_v37 }
  0xb6   :  { %v267_v38 = vpop.f32.mrf.mxu2 }
  0xb7   :  { %v268_v39 = vadd.f32 %v267_v38, %v833_v60  ;;  %v296_v40 = vpop.f32.mrf.mxu3  ;;  %v211_v41 = vpop.f32.mrf.mxu0 }
  0xb8   :  { %v297_v42 = vadd.f32 %v296_v40, %v836_v61  ;;  %v212_v43 = vadd.f32 %v211_v41, %v825_v53  ;;  %v240_v44 = vpop.f32.mrf.mxu1 }
  0xb9   :  { %v241_v45 = vadd.f32 %v240_v44, %v828_v54 }
  0xba   :  { %v431_v46 = vpack.c.bf16 %v297_v42, %v268_v39 }
  0xbb   :  { %v432_v47 = vpack.c.bf16 %v241_v45, %v212_v43 }
  0xbc   :  { %447 = vst [vmem:[#allocation5 + $0x48] sm:$0xff] %v431_v46 }
  0xbd   :  { %448 = vst [vmem:[#allocation5 + $0x50] sm:$0xff] %v432_v47 }
  0xbe   :  { %v269_v48 = vpop.f32.mrf.mxu2 }
  0xbf   :  { %v270_v49 = vadd.f32 %v269_v48, %v833_v60  ;;  %v298_v50 = vpop.f32.mrf.mxu3  ;;  %v214_v51 = vpop.f32.mrf.mxu0 }
  0xc0   :  { %v299_v55 = vadd.f32 %v298_v50, %v836_v61  ;;  %v215_v56 = vadd.f32 %v214_v51, %v825_v53  ;;  %v243_v57 = vpop.f32.mrf.mxu1 }
  0xc1   :  { %v244_v58 = vadd.f32 %v243_v57, %v828_v54 }
  0xc2   :  { %v433_v59 = vpack.c.bf16 %v299_v55, %v270_v49 }
  0xc3   :  { %v434_v62 = vpack.c.bf16 %v244_v58, %v215_v56 }
  0xc4   :  { %449 = vst [vmem:[#allocation5 + $0x58] sm:$0xff] %v433_v59 }
  0xc5   :  { %450 = vst [vmem:[#allocation5 + $0x60] sm:$0xff] %v434_v62 }
  0xc6   :  { %v272_v63 = vpop.f32.mrf.mxu2 }
  0xc7   :  { %v273_v0 = vadd.f32 %v272_v63, %v833_v60  ;;  %v301_v1 = vpop.f32.mrf.mxu3  ;;  %v216_v2 = vpop.f32.mrf.mxu0 }
  0xc8   :  { %v302_v3 = vadd.f32 %v301_v1, %v836_v61  ;;  %v217_v4 = vadd.f32 %v216_v2, %v825_v53  ;;  %v245_v5 = vpop.f32.mrf.mxu1 }
  0xc9   :  { %v246_v6 = vadd.f32 %v245_v5, %v828_v54 }
  0xca   :  { %v435_v7 = vpack.c.bf16 %v302_v3, %v273_v0 }
  0xcb   :  { %v436_v8 = vpack.c.bf16 %v246_v6, %v217_v4 }
  0xcc   :  { %451 = vst [vmem:[#allocation5 + $0x68] sm:$0xff] %v435_v7 }
  0xcd   :  { %452 = vst [vmem:[#allocation5 + $0x70] sm:$0xff] %v436_v8 }
  0xce   :  { %v274_v11 = vpop.f32.mrf.mxu2 }
  0xcf   :  { %v275_v53 = vadd.f32 %v274_v11, %v833_v60  ;;  %v303_v54 = vpop.f32.mrf.mxu3  ;;  %v315_v12 = vpop.f32.mrf.mxu0 }
  0xd0   :  { %v304_v13 = vadd.f32 %v303_v54, %v836_v61  ;;  %v316_v14 = vadd.f32 %v315_v12, %v867_v9  ;;  %v344_v15 = vpop.f32.mrf.mxu1 }
  0xd1   :  { %v345_v16 = vadd.f32 %v344_v15, %v870_v10 }
  0xd2   :  { %v437_v17 = vpack.c.bf16 %v304_v13, %v275_v53 }
  0xd3   :  { %v454_v18 = vpack.c.bf16 %v345_v16, %v316_v14 }
  0xd4   :  { %453 = vst [vmem:[#allocation5 + $0x78] sm:$0xff] %v437_v17 }
  0xd5   :  { %470 = vst [vmem:[#allocation6] sm:$0xff] %v454_v18  ;;  %498 = dma.vmem_to_hbm [thread:$0]  %s491_s30, 2048, %s493_s7, [#allocation4], %s744_s3, %s744_s3, %s745_s8  }
  0xd6   :  { %v373_v60 = vpop.f32.mrf.mxu2 }
  0xd7   :  { %v374_v61 = vadd.f32 %v373_v60, %v880_v19  ;;  %v402_v21 = vpop.f32.mrf.mxu3  ;;  %v317_v22 = vpop.f32.mrf.mxu0 }
  0xd8   :  { %v403_v23 = vadd.f32 %v402_v21, %v883_v20  ;;  %v318_v24 = vadd.f32 %v317_v22, %v867_v9  ;;  %v346_v25 = vpop.f32.mrf.mxu1 }
  0xd9   :  { %v347_v52 = vadd.f32 %v346_v25, %v870_v10 }
  0xda   :  { %v455_v26 = vpack.c.bf16 %v403_v23, %v374_v61 }
  0xdb   :  { %v456_v27 = vpack.c.bf16 %v347_v52, %v318_v24 }
  0xdc   :  { %471 = vst [vmem:[#allocation6 + $0x8] sm:$0xff] %v455_v26 }
  0xdd   :  { %472 = vst [vmem:[#allocation6 + $0x10] sm:$0xff] %v456_v27 }
  0xde   :  { %v375_v28 = vpop.f32.mrf.mxu2 }
  0xdf   :  { %v376_v29 = vadd.f32 %v375_v28, %v880_v19  ;;  %v404_v30 = vpop.f32.mrf.mxu3  ;;  %v320_v31 = vpop.f32.mrf.mxu0 }
  0xe0   :  { %v405_v32 = vadd.f32 %v404_v30, %v883_v20  ;;  %v321_v33 = vadd.f32 %v320_v31, %v867_v9  ;;  %v349_v34 = vpop.f32.mrf.mxu1 }
  0xe1   :  { %v350_v35 = vadd.f32 %v349_v34, %v870_v10 }
  0xe2   :  { %v457_v36 = vpack.c.bf16 %v405_v32, %v376_v29 }
  0xe3   :  { %v458_v37 = vpack.c.bf16 %v350_v35, %v321_v33 }
  0xe4   :  { %473 = vst [vmem:[#allocation6 + $0x18] sm:$0xff] %v457_v36 }
  0xe5   :  { %474 = vst [vmem:[#allocation6 + $0x20] sm:$0xff] %v458_v37 }
  0xe6   :  { %v378_v38 = vpop.f32.mrf.mxu2 }
  0xe7   :  { %v379_v39 = vadd.f32 %v378_v38, %v880_v19  ;;  %v407_v40 = vpop.f32.mrf.mxu3  ;;  %v322_v41 = vpop.f32.mrf.mxu0 }
  0xe8   :  { %v408_v42 = vadd.f32 %v407_v40, %v883_v20  ;;  %v323_v43 = vadd.f32 %v322_v41, %v867_v9  ;;  %v351_v44 = vpop.f32.mrf.mxu1 }
  0xe9   :  { %v352_v45 = vadd.f32 %v351_v44, %v870_v10 }
  0xea   :  { %v459_v46 = vpack.c.bf16 %v408_v42, %v379_v39 }
  0xeb   :  { %v460_v47 = vpack.c.bf16 %v352_v45, %v323_v43 }
  0xec   :  { %475 = vst [vmem:[#allocation6 + $0x28] sm:$0xff] %v459_v46 }
  0xed   :  { %476 = vst [vmem:[#allocation6 + $0x30] sm:$0xff] %v460_v47 }
  0xee   :  { %v380_v48 = vpop.f32.mrf.mxu2 }
  0xef   :  { %v381_v49 = vadd.f32 %v380_v48, %v880_v19  ;;  %v409_v50 = vpop.f32.mrf.mxu3  ;;  %v325_v51 = vpop.f32.mrf.mxu0 }
  0xf0   :  { %v410_v55 = vadd.f32 %v409_v50, %v883_v20  ;;  %v326_v56 = vadd.f32 %v325_v51, %v867_v9  ;;  %v354_v57 = vpop.f32.mrf.mxu1 }
  0xf1   :  { %v355_v58 = vadd.f32 %v354_v57, %v870_v10 }
  0xf2   :  { %v461_v59 = vpack.c.bf16 %v410_v55, %v381_v49 }
  0xf3   :  { %v462_v62 = vpack.c.bf16 %v355_v58, %v326_v56 }
  0xf4   :  { %477 = vst [vmem:[#allocation6 + $0x38] sm:$0xff] %v461_v59 }
  0xf5   :  { %478 = vst [vmem:[#allocation6 + $0x40] sm:$0xff] %v462_v62 }
  0xf6   :  { %v383_v63 = vpop.f32.mrf.mxu2 }
  0xf7   :  { %v384_v0 = vadd.f32 %v383_v63, %v880_v19  ;;  %v412_v1 = vpop.f32.mrf.mxu3  ;;  %v327_v2 = vpop.f32.mrf.mxu0 }
  0xf8   :  { %v413_v3 = vadd.f32 %v412_v1, %v883_v20  ;;  %v328_v4 = vadd.f32 %v327_v2, %v867_v9  ;;  %v356_v5 = vpop.f32.mrf.mxu1 }
  0xf9   :  { %v357_v6 = vadd.f32 %v356_v5, %v870_v10 }
  0xfa   :  { %v463_v7 = vpack.c.bf16 %v413_v3, %v384_v0 }
  0xfb   :  { %v464_v8 = vpack.c.bf16 %v357_v6, %v328_v4 }
  0xfc   :  { %479 = vst [vmem:[#allocation6 + $0x48] sm:$0xff] %v463_v7 }
  0xfd   :  { %480 = vst [vmem:[#allocation6 + $0x50] sm:$0xff] %v464_v8 }
  0xfe   :  { %v385_v11 = vpop.f32.mrf.mxu2 }
  0xff   :  { %v386_v53 = vadd.f32 %v385_v11, %v880_v19  ;;  %v414_v54 = vpop.f32.mrf.mxu3  ;;  %v330_v12 = vpop.f32.mrf.mxu0 }
 0x100   :  { %v415_v13 = vadd.f32 %v414_v54, %v883_v20  ;;  %v331_v14 = vadd.f32 %v330_v12, %v867_v9  ;;  %v359_v15 = vpop.f32.mrf.mxu1 }
 0x101   :  { %v360_v16 = vadd.f32 %v359_v15, %v870_v10 }
 0x102   :  { %v465_v17 = vpack.c.bf16 %v415_v13, %v386_v53 }
 0x103   :  { %v466_v18 = vpack.c.bf16 %v360_v16, %v331_v14 }
 0x104   :  { %481 = vst [vmem:[#allocation6 + $0x58] sm:$0xff] %v465_v17 }
 0x105   :  { %482 = vst [vmem:[#allocation6 + $0x60] sm:$0xff] %v466_v18 }
 0x106   :  { %v388_v60 = vpop.f32.mrf.mxu2 }
 0x107   :  { %v389_v61 = vadd.f32 %v388_v60, %v880_v19  ;;  %v417_v21 = vpop.f32.mrf.mxu3  ;;  %v332_v22 = vpop.f32.mrf.mxu0 }
 0x108   :  { %v418_v23 = vadd.f32 %v417_v21, %v883_v20  ;;  %v333_v24 = vadd.f32 %v332_v22, %v867_v9  ;;  %v361_v25 = vpop.f32.mrf.mxu1 }
 0x109   :  { %v362_v52 = vadd.f32 %v361_v25, %v870_v10 }
 0x10a   :  { %v467_v26 = vpack.c.bf16 %v418_v23, %v389_v61 }
 0x10b   :  { %v468_v27 = vpack.c.bf16 %v362_v52, %v333_v24 }
 0x10c   :  { %483 = vst [vmem:[#allocation6 + $0x68] sm:$0xff] %v467_v26 }
 0x10d   :  { %484 = vst [vmem:[#allocation6 + $0x70] sm:$0xff] %v468_v27 }
 0x10e   :  { %v390_v28 = vpop.f32.mrf.mxu2 }
 0x10f   :  { %v391_v29 = vadd.f32 %v390_v28, %v880_v19  ;;  %v419_v30 = vpop.f32.mrf.mxu3 }
 0x110   :  { %v420_v31 = vadd.f32 %v419_v30, %v883_v20 }
 0x112   :  { %v469_v9 = vpack.c.bf16 %v420_v31, %v391_v29 }
 0x114   :  { %485 = vst [vmem:[#allocation6 + $0x78] sm:$0xff] %v469_v9 }
 0x115   :  { %511 = dma.vmem_to_hbm [thread:$0]  %s504_s10, 2048, %s506_s13, [#allocation7], %s744_s3, %s744_s3, %s745_s8  }
 0x116   :  { %736 = dma.done.wait [#allocation4], 2048  }
 0x117   :  { %737 = vsyncadd [#allocation4], 4294965248 }
 0x118   :  { %738 = dma.done.wait [#allocation7], 2048  }
 0x119   :  { %739 = vsyncadd [#allocation7], 4294965248 }
 0x11a   :  { %520 = vsyncpa [#allocation3], 1 }
 0x11b   :  { %521 = vsyncpa [#allocation4], 1 }
 0x11c   :  { %522 = vsyncpa [#allocation7], 1 }

</bundles_post_ra>
